<compile_context>
chip_gen: v5e
topology: v5e:2x2
jax: 0.10.0
libtpu: 0.0.40
codegen_flags: <defaults>
</compile_context>

<pallas_src>
import functools

import jax
import jax.numpy as jnp
from jax.experimental import pallas as pl
from jax.experimental.pallas import tpu as pltpu

_LANE = 128        # one head per 128-lane segment
_NEG_INF = -1e9    # bias for padded lanes -> exp() underflows to exactly 0 in f32


def _softmax_lastdim(z):
    """Numerically stable softmax over the last (lane) dim, EUP reciprocal."""
    m = jnp.max(z, axis=-1, keepdims=True)
    e = jnp.exp(z - m)
    return e * pl.reciprocal(jnp.sum(e, axis=-1, keepdims=True), approx=True)


def _refiner_kernel(x_ref, w_ref, b_ref, final_ref, cls_ref, *, depth, n_pad, n_valid):
    """One grid step processes bt batch elements (bt = rows // n_pad).

    x_ref:     (bt*n_pad, D)          bf16 activations (flattened in the wrapper)
    w_ref:     (D, (2+depth)*128)     bf16 packed, pre-transposed weights
    b_ref:     (1, (2+depth)*128)     f32 packed biases (-1e9 on padded lanes)
    final_ref: (bt*n_pad, 128)        bf16 averaged refine softmax; lanes [0:C]
    cls_ref:   (1, bt, 128)           f32 im_cls_score in lanes [0:C]
    """
    rows, _ = x_ref.shape
    bt = rows // n_pad

    # Single MXU matmul for every head; f32 accumulate + f32 bias.
    logits = jnp.dot(x_ref[...], w_ref[...], preferred_element_type=jnp.float32)
    logits = logits + b_ref[...]                              # (rows, ct)

    # --- MIL path: softmax over classes (dim=2) x softmax over proposals (dim=1).
    # Only these two 128-lane segments need the (bt, N, 128) view.
    seg_c = logits[:, 0:_LANE].reshape(bt, n_pad, _LANE)
    m_c = jnp.max(seg_c, axis=-1, keepdims=True)
    e_c = jnp.exp(seg_c - m_c)
    sm_cls = e_c * pl.reciprocal(jnp.sum(e_c, axis=-1, keepdims=True), approx=True)

    seg_p = logits[:, _LANE:2 * _LANE].reshape(bt, n_pad, _LANE)
    m_p = jnp.max(seg_p, axis=1, keepdims=True)
    e_p = jnp.exp(seg_p - m_p)
    if n_valid != n_pad:  # static: only traced when proposal padding exists
        row = jax.lax.broadcasted_iota(jnp.int32, (bt, n_pad, 1), 1)
        e_p = jnp.where(row < n_valid, e_p, 0.0)
    # Exact divide here: this denominator feeds the N-accumulated im_cls_score.
    sm_prop = e_p / jnp.sum(e_p, axis=1, keepdims=True)

    # Padded class lanes of sm_cls are exactly 0, so the 128-wide product/sum is
    # correct and the stores stay lane-dense.
    mil = sm_cls * sm_prop                                    # (bt, n_pad, 128)
    cls_ref[0] = jnp.sum(mil, axis=1)                         # (bt, 128)

    # --- Refinement agents: lane-wise softmax, averaged (stay flat 2-D).
    acc = _softmax_lastdim(logits[:, 2 * _LANE:3 * _LANE])
    for k in range(1, depth):                                 # depth small; unrolled
        lo = (2 + k) * _LANE
        acc = acc + _softmax_lastdim(logits[:, lo:lo + _LANE])
    final_ref[...] = (acc * (1.0 / depth)).astype(final_ref.dtype)


def _pack_heads(params, refiner_depth):
    """Pack all head weights into one pre-transposed, lane-aligned slab."""
    wc, bc = params["w_cls"], params["b_cls"]
    wp, bp = params["w_prop"], params["b_prop"]
    wr, br = params["w_ref"], params["b_ref"]
    C, D = wc.shape
    Cp1 = wr.shape[1]
    assert Cp1 <= _LANE, "each head must fit one 128-lane segment"

    n_seg = 2 + refiner_depth
    ct = n_seg * _LANE
    w_packed = jnp.zeros((D, ct), jnp.float32)
    b_packed = jnp.full((ct,), _NEG_INF, jnp.float32)

    # Segment 0: cls head.
    w_packed = w_packed.at[:, 0:C].set(wc.T)
    b_packed = b_packed.at[0:C].set(bc.reshape(-1))
    # Segment 1: prop head.
    w_packed = w_packed.at[:, _LANE:_LANE + C].set(wp.T)
    b_packed = b_packed.at[_LANE:_LANE + C].set(bp.reshape(-1))
    # Segments 2..: refine heads, foreground classes first, background class last.
    for k in range(refiner_depth):
        off = (2 + k) * _LANE
        w_packed = w_packed.at[:, off:off + C].set(wr[k, 1:, :].T)
        w_packed = w_packed.at[:, off + C].set(wr[k, 0, :])
        b_packed = b_packed.at[off:off + C].set(br[k, 1:])
        b_packed = b_packed.at[off + C].set(br[k, 0])

    return w_packed, b_packed.reshape(1, ct), C, ct


def _tpu_vmem_capacity_bytes():
    try:
        cap = getattr(pltpu.get_tpu_info(), "vmem_capacity_bytes", None)
        if cap:
            return int(cap)
    except Exception:
        pass
    return 64 << 20   # conservative fallback: v7x per-TensorCore VMEM


def _step_vmem_bytes(bt, n_pad, d, ct):
    """Rough per-step VMEM footprint for batch-tile selection."""
    x_blk = bt * n_pad * d * 2                # bf16 activations (double-buffered)
    w_blk = d * ct * 2 + ct * 4               # bf16 weights + f32 bias (single buf)
    logits = bt * n_pad * ct * 4              # f32 logits value
    interm = 6 * bt * n_pad * _LANE * 4       # softmax temporaries / mil / acc
    out_f = bt * n_pad * _LANE * 2            # bf16 final block (double-buffered)
    out_c = bt * _LANE * 4                    # f32 cls block (double-buffered)
    return 2 * x_blk + w_blk + logits + interm + 2 * out_f + 2 * out_c


def _const_block_spec(block_shape):
    """BlockSpec for a constant-index block; single-buffered when supported."""
    index_map = lambda b: (0,) * len(block_shape)
    try:
        return pl.BlockSpec(block_shape, index_map, pipeline_mode=pl.Buffered(1))
    except TypeError:
        return pl.BlockSpec(block_shape, index_map)


def refiner_forward(x, params, refiner_depth, *, compute_dtype=jnp.bfloat16,
                    batch_tile=None):
    """x: (B, N, D) float32.

    Returns {'final_score': (B,N,C) bf16, 'cls_logits': (B,C) f32}.
    """
    B, N, D = x.shape
    w_packed, b_packed, C, ct = _pack_heads(params, refiner_depth)

    vmem_cap = _tpu_vmem_capacity_bytes()
    budget = int(vmem_cap * 0.6)              # headroom for compiler scratch
    vmem_limit = int(vmem_cap * 0.85)

    # Sublane-align N so all (bt*n_pad, 128) blocks satisfy the (8,128) rule.
    n_pad = ((N + 7) // 8) * 8

    # Pick the batch tile: as large as the VMEM budget allows, but capped at
    # ceil(B/2) so the batch grid always has >= 2 programs (v7x two-TC sharding).
    bt_cap = B if batch_tile is None else max(1, min(batch_tile, B))
    if B >= 2:
        bt_cap = min(bt_cap, -(-B // 2))
    bt = 1
    for cand in range(bt_cap, 0, -1):
        if _step_vmem_bytes(cand, n_pad, D, ct) <= budget:
            bt = cand
            break

    b_pad = -(-B // bt) * bt
    if b_pad != B or n_pad != N:
        x = jnp.pad(x, ((0, b_pad - B), (0, n_pad - N), (0, 0)))

    x_flat = x.reshape(b_pad * n_pad, D).astype(compute_dtype)   # wrapper-side flatten
    w_c = w_packed.astype(compute_dtype)

    n_blocks = b_pad // bt
    rows_blk = bt * n_pad

    kernel = functools.partial(_refiner_kernel, depth=refiner_depth,
                               n_pad=n_pad, n_valid=N)

    final_flat, cls_blk = pl.pallas_call(
        kernel,
        out_shape=(
            jax.ShapeDtypeStruct((b_pad * n_pad, _LANE), jnp.bfloat16),
            jax.ShapeDtypeStruct((n_blocks, bt, _LANE), jnp.float32),
        ),
        grid_spec=pltpu.PrefetchScalarGridSpec(
            num_scalar_prefetch=0,
            grid=(n_blocks,),
            in_specs=[
                pl.BlockSpec((rows_blk, D), lambda b: (b, 0)),   # activations
                _const_block_spec((D, ct)),                      # packed weights
                _const_block_spec((1, ct)),                      # packed biases
            ],
            out_specs=[
                pl.BlockSpec((rows_blk, _LANE), lambda b: (b, 0)),
                pl.BlockSpec((1, bt, _LANE), lambda b: (b, 0, 0)),
            ],
        ),
        compiler_params=pltpu.CompilerParams(
            dimension_semantics=("parallel",),   # batch axis is fully independent
            vmem_limit_bytes=vmem_limit,
        ),
    )(x_flat, w_c, b_packed)

    final = final_flat.reshape(b_pad, n_pad, _LANE)[:B, :N, :C]
    cls = cls_blk.reshape(b_pad, _LANE)[:B, :C]
    return {"final_score": final, "cls_logits": cls}


def _reference_forward(x, params, refiner_depth):
    """Pure-JAX reference matching the PyTorch module (f32)."""
    wc, bc = params["w_cls"], params["b_cls"]
    wp, bp = params["w_prop"], params["b_prop"]
    wr, br = params["w_ref"], params["b_ref"]
    lc = jnp.einsum("bnd,cd->bnc", x, wc) + bc[0]
    lp = jnp.einsum("bnd,cd->bnc", x, wp) + bp[0]
    mil = jax.nn.softmax(lc, axis=2) * jax.nn.softmax(lp, axis=1)
    im_cls = mil.sum(axis=1)
    refine = [jax.nn.softmax(jnp.einsum("bnd,cd->bnc", x, wr[k]) + br[k], axis=2)
              for k in range(refiner_depth)]
    final = sum(refine) / refiner_depth
    return {"final_score": final[:, :, 1:], "cls_logits": im_cls}


def make_params(key, hidden_dim, num_classes, refiner_depth):
    """Mimics the PyTorch _init_weights (normal std=0.01, zero bias)."""
    k1, k2, k3 = jax.random.split(key, 3)
    C, Cp1, D = num_classes, num_classes + 1, hidden_dim
    return {
        "w_cls": 0.01 * jax.random.normal(k1, (C, D), jnp.float32),
        "b_cls": jnp.zeros((1, C), jnp.float32),
        "w_prop": 0.01 * jax.random.normal(k2, (C, D), jnp.float32),
        "b_prop": jnp.zeros((1, C), jnp.float32),
        "w_ref": 0.01 * jax.random.normal(k3, (refiner_depth, Cp1, D), jnp.float32),
        "b_ref": jnp.zeros((refiner_depth, Cp1), jnp.float32),
    }


if __name__ == "__main__":
    B, N, D = 2, 8, 32          # batch, proposals, hidden_dim
    num_classes = 4
    refiner_depth = 3

    key = jax.random.PRNGKey(0)
    kx, kp = jax.random.split(key)
    x = jax.random.normal(kx, (B, N, D), jnp.float32)
    params = make_params(kp, D, num_classes, refiner_depth)

    out = refiner_forward(x, params, refiner_depth)
    jax.block_until_ready(out)

    ref = _reference_forward(x, params, refiner_depth)
    assert out["final_score"].shape == ref["final_score"].shape
    assert out["cls_logits"].shape == ref["cls_logits"].shape
    # bf16 matmul operands + bf16 final store + approx per-row reciprocal =>
    # relaxed (but still tight vs. the O(0.1..0.5) probability magnitudes) tolerance.
    assert jnp.allclose(out["final_score"].astype(jnp.float32), ref["final_score"],
                        atol=5e-3, rtol=3e-2)
    assert jnp.allclose(out["cls_logits"], ref["cls_logits"], atol=3e-3, rtol=3e-2)

    print("KERNEL_OK")
</pallas_src>

<mosaic_0001>
module attributes {stable_mosaic.version = 11 : i64} {
  func.func @_refiner_kernel(%arg0: i32, %arg1: memref<8x32xbf16, #tpu.memory_space<vmem>>, %arg2: memref<32x640xbf16, #tpu.memory_space<vmem>>, %arg3: memref<1x640xf32, #tpu.memory_space<vmem>>, %arg4: memref<8x128xbf16, #tpu.memory_space<vmem>>, %arg5: memref<1x1x128xf32, #tpu.memory_space<vmem>>) attributes {dimension_semantics = [#tpu.dimension_semantics<parallel>], iteration_bounds = array<i64: 2>, scalar_prefetch = 0 : i64, scratch_operands = 0 : i64, tpu.core_type = #tpu.core_type<tc>, window_params = [{transform_indices = @transform_0, window_bounds = array<i64: 8, 32>}, {pipeline_mode = #tpu.pipeline_mode<synchronous>, transform_indices = @transform_1, window_bounds = array<i64: 32, 640>}, {pipeline_mode = #tpu.pipeline_mode<synchronous>, transform_indices = @transform_2, window_bounds = array<i64: 1, 640>}, {transform_indices = @transform_3, window_bounds = array<i64: 8, 128>}, {transform_indices = @transform_4, window_bounds = array<i64: 1, 1, 128>}]} {
    %c0 = arith.constant 0 : index
    %c0_0 = arith.constant 0 : index
    %0 = vector.load %arg1[%c0, %c0_0] : memref<8x32xbf16, #tpu.memory_space<vmem>>, vector<8x32xbf16>
    %c0_1 = arith.constant 0 : index
    %c0_2 = arith.constant 0 : index
    %1 = vector.load %arg2[%c0_1, %c0_2] : memref<32x640xbf16, #tpu.memory_space<vmem>>, vector<32x640xbf16>
    %cst = arith.constant dense<0.000000e+00> : vector<8x640xf32>
    %2 = tpu.matmul %0, %1, %cst {dimension_numbers = #tpu.dot_dimension_numbers<[1], [0], [0], [1], [0, 0, 1, 1], [], []>} : vector<8x32xbf16>, vector<32x640xbf16>, vector<8x640xf32> -> vector<8x640xf32>
    %c0_3 = arith.constant 0 : index
    %c0_4 = arith.constant 0 : index
    %3 = vector.load %arg3[%c0_3, %c0_4] : memref<1x640xf32, #tpu.memory_space<vmem>>, vector<1x640xf32>
    %4 = vector.broadcast %3 : vector<1x640xf32> to vector<8x640xf32>
    %5 = arith.addf %2, %4 : vector<8x640xf32>
    %6 = vector.extract_strided_slice %5 {offsets = [0, 0], sizes = [8, 128], strides = [1, 1]} : vector<8x640xf32> to vector<8x128xf32>
    %7 = vector.shape_cast %6 : vector<8x128xf32> to vector<1x8x128xf32>
    %cst_5 = arith.constant dense<0xFF800000> : vector<1x8xf32>
    %8 = vector.multi_reduction <maximumf>, %7, %cst_5 [2] : vector<1x8x128xf32> to vector<1x8xf32>
    %9 = vector.shape_cast %8 : vector<1x8xf32> to vector<1x8x1xf32>
    %10 = vector.broadcast %9 : vector<1x8x1xf32> to vector<1x8x128xf32>
    %11 = arith.subf %7, %10 : vector<1x8x128xf32>
    %12 = math.exp %11 : vector<1x8x128xf32>
    %cst_6 = arith.constant dense<0.000000e+00> : vector<1x8xf32>
    %13 = vector.multi_reduction <add>, %12, %cst_6 [2] : vector<1x8x128xf32> to vector<1x8xf32>
    %14 = vector.shape_cast %13 : vector<1x8xf32> to vector<1x8x1xf32>
    %15 = tpu.reciprocal %14 {approx = true} : vector<1x8x1xf32> -> vector<1x8x1xf32>
    %16 = vector.broadcast %15 : vector<1x8x1xf32> to vector<1x8x128xf32>
    %17 = arith.mulf %12, %16 : vector<1x8x128xf32>
    %18 = vector.extract_strided_slice %5 {offsets = [0, 128], sizes = [8, 128], strides = [1, 1]} : vector<8x640xf32> to vector<8x128xf32>
    %19 = vector.shape_cast %18 : vector<8x128xf32> to vector<1x8x128xf32>
    %cst_7 = arith.constant dense<0xFF800000> : vector<1x128xf32>
    %20 = vector.multi_reduction <maximumf>, %19, %cst_7 [1] : vector<1x8x128xf32> to vector<1x128xf32>
    %21 = vector.shape_cast %20 : vector<1x128xf32> to vector<1x1x128xf32>
    %22 = vector.broadcast %21 : vector<1x1x128xf32> to vector<1x8x128xf32>
    %23 = arith.subf %19, %22 : vector<1x8x128xf32>
    %24 = math.exp %23 : vector<1x8x128xf32>
    %cst_8 = arith.constant dense<0.000000e+00> : vector<1x128xf32>
    %25 = vector.multi_reduction <add>, %24, %cst_8 [1] : vector<1x8x128xf32> to vector<1x128xf32>
    %26 = vector.shape_cast %25 : vector<1x128xf32> to vector<1x1x128xf32>
    %27 = vector.broadcast %26 : vector<1x1x128xf32> to vector<1x8x128xf32>
    %28 = arith.divf %24, %27 : vector<1x8x128xf32>
    %29 = arith.mulf %17, %28 : vector<1x8x128xf32>
    %cst_9 = arith.constant dense<0.000000e+00> : vector<1x128xf32>
    %30 = vector.multi_reduction <add>, %29, %cst_9 [1] : vector<1x8x128xf32> to vector<1x128xf32>
    %c0_10 = arith.constant 0 : index
    %c0_11 = arith.constant 0 : index
    %c0_12 = arith.constant 0 : index
    %31 = vector.load %arg5[%c0_10, %c0_11, %c0_12] : memref<1x1x128xf32, #tpu.memory_space<vmem>>, vector<1x1x128xf32>
    %32 = vector.shape_cast %31 : vector<1x1x128xf32> to vector<1x128xf32>
    %33 = vector.shape_cast %30 : vector<1x128xf32> to vector<1x1x128xf32>
    tpu.vector_store %arg5[%c0_10, %c0_11, %c0_12], %33 {strides = array<i32>} : memref<1x1x128xf32, #tpu.memory_space<vmem>>, vector<1x1x128xf32>,
    %34 = vector.extract_strided_slice %5 {offsets = [0, 256], sizes = [8, 128], strides = [1, 1]} : vector<8x640xf32> to vector<8x128xf32>
    %cst_13 = arith.constant dense<0xFF800000> : vector<8xf32>
    %35 = vector.multi_reduction <maximumf>, %34, %cst_13 [1] : vector<8x128xf32> to vector<8xf32>
    %36 = vector.shape_cast %35 : vector<8xf32> to vector<8x1xf32>
    %37 = vector.broadcast %36 : vector<8x1xf32> to vector<8x128xf32>
    %38 = arith.subf %34, %37 : vector<8x128xf32>
    %39 = math.exp %38 : vector<8x128xf32>
    %cst_14 = arith.constant dense<0.000000e+00> : vector<8xf32>
    %40 = vector.multi_reduction <add>, %39, %cst_14 [1] : vector<8x128xf32> to vector<8xf32>
    %41 = vector.shape_cast %40 : vector<8xf32> to vector<8x1xf32>
    %42 = tpu.reciprocal %41 {approx = true} : vector<8x1xf32> -> vector<8x1xf32>
    %43 = vector.broadcast %42 : vector<8x1xf32> to vector<8x128xf32>
    %44 = arith.mulf %39, %43 : vector<8x128xf32>
    %45 = vector.extract_strided_slice %5 {offsets = [0, 384], sizes = [8, 128], strides = [1, 1]} : vector<8x640xf32> to vector<8x128xf32>
    %cst_15 = arith.constant dense<0xFF800000> : vector<8xf32>
    %46 = vector.multi_reduction <maximumf>, %45, %cst_15 [1] : vector<8x128xf32> to vector<8xf32>
    %47 = vector.shape_cast %46 : vector<8xf32> to vector<8x1xf32>
    %48 = vector.broadcast %47 : vector<8x1xf32> to vector<8x128xf32>
    %49 = arith.subf %45, %48 : vector<8x128xf32>
    %50 = math.exp %49 : vector<8x128xf32>
    %cst_16 = arith.constant dense<0.000000e+00> : vector<8xf32>
    %51 = vector.multi_reduction <add>, %50, %cst_16 [1] : vector<8x128xf32> to vector<8xf32>
    %52 = vector.shape_cast %51 : vector<8xf32> to vector<8x1xf32>
    %53 = tpu.reciprocal %52 {approx = true} : vector<8x1xf32> -> vector<8x1xf32>
    %54 = vector.broadcast %53 : vector<8x1xf32> to vector<8x128xf32>
    %55 = arith.mulf %50, %54 : vector<8x128xf32>
    %56 = arith.addf %44, %55 : vector<8x128xf32>
    %57 = vector.extract_strided_slice %5 {offsets = [0, 512], sizes = [8, 128], strides = [1, 1]} : vector<8x640xf32> to vector<8x128xf32>
    %cst_17 = arith.constant dense<0xFF800000> : vector<8xf32>
    %58 = vector.multi_reduction <maximumf>, %57, %cst_17 [1] : vector<8x128xf32> to vector<8xf32>
    %59 = vector.shape_cast %58 : vector<8xf32> to vector<8x1xf32>
    %60 = vector.broadcast %59 : vector<8x1xf32> to vector<8x128xf32>
    %61 = arith.subf %57, %60 : vector<8x128xf32>
    %62 = math.exp %61 : vector<8x128xf32>
    %cst_18 = arith.constant dense<0.000000e+00> : vector<8xf32>
    %63 = vector.multi_reduction <add>, %62, %cst_18 [1] : vector<8x128xf32> to vector<8xf32>
    %64 = vector.shape_cast %63 : vector<8xf32> to vector<8x1xf32>
    %65 = tpu.reciprocal %64 {approx = true} : vector<8x1xf32> -> vector<8x1xf32>
    %66 = vector.broadcast %65 : vector<8x1xf32> to vector<8x128xf32>
    %67 = arith.mulf %62, %66 : vector<8x128xf32>
    %68 = arith.addf %56, %67 : vector<8x128xf32>
    %cst_19 = arith.constant 0.333333343 : f32
    %69 = vector.broadcast %cst_19 : f32 to vector<8x128xf32>
    %70 = arith.mulf %68, %69 : vector<8x128xf32>
    %71 = arith.truncf %70 : vector<8x128xf32> to vector<8x128xbf16>
    %c0_20 = arith.constant 0 : index
    %c0_21 = arith.constant 0 : index
    %72 = vector.load %arg4[%c0_20, %c0_21] : memref<8x128xbf16, #tpu.memory_space<vmem>>, vector<8x128xbf16>
    tpu.vector_store %arg4[%c0_20, %c0_21], %71 {strides = array<i32>} : memref<8x128xbf16, #tpu.memory_space<vmem>>, vector<8x128xbf16>,
    return
  }
  func.func @transform_0(%arg0: i32) -> (i32, i32) {
    %c0_i32 = arith.constant 0 : i32
    %c0_i32_0 = arith.constant 0 : i32
    return %arg0, %c0_i32 : i32, i32
  }
  func.func @transform_1(%arg0: i32) -> (i32, i32) {
    %c0_i32 = arith.constant 0 : i32
    %c0_i32_0 = arith.constant 0 : i32
    %c0_i32_1 = arith.constant 0 : i32
    return %c0_i32, %c0_i32_0 : i32, i32
  }
  func.func @transform_2(%arg0: i32) -> (i32, i32) {
    %c0_i32 = arith.constant 0 : i32
    %c0_i32_0 = arith.constant 0 : i32
    %c0_i32_1 = arith.constant 0 : i32
    return %c0_i32, %c0_i32_0 : i32, i32
  }
  func.func @transform_3(%arg0: i32) -> (i32, i32) {
    %c0_i32 = arith.constant 0 : i32
    %c0_i32_0 = arith.constant 0 : i32
    return %arg0, %c0_i32 : i32, i32
  }
  func.func @transform_4(%arg0: i32) -> (i32, i32, i32) {
    %c0_i32 = arith.constant 0 : i32
    %c0_i32_0 = arith.constant 0 : i32
    %c0_i32_1 = arith.constant 0 : i32
    return %arg0, %c0_i32, %c0_i32_0 : i32, i32, i32
  }
}

</mosaic_0001>

<bundles_post_ra>
// kernel: tpu_custom_call.1
= control target key start
LH: loop header
LB: loop body
LE: loop exit
PB: predicated region body
PF: predicated region fallthrough
CT: control target
= control target key end

     0   :  { %10 = vsyncpa [#allocation3], 0  ;;  %s1204_s0 = inlined_call_operand.hbm [shape: bf16[16,32], index: 0, kind: input, shape index: {}]   ;;  %s1205_s1 = inlined_call_operand.hbm [shape: bf16[32,640], index: 1, kind: input, shape index: {}]   ;;  %s1206_s2 = inlined_call_operand.hbm [shape: f32[1,640], index: 2, kind: input, shape index: {}]   ;;  %s1207_s3 = inlined_call_operand.hbm [shape: bf16[16,128], index: 3, kind: output, shape index: {0}]   ;;  %s1208_s4 = inlined_call_operand.hbm [shape: f32[2,1,128], index: 4, kind: output, shape index: {1}]  }
   0x1   :  { %12 = vsyncpa [#allocation3 + $0x1], 0 }
   0x2   :  { %13 = vsyncpa [#allocation6], 0 }
   0x3   :  { %14 = vsyncpa [#allocation4], 0 }
   0x4   :  { %16 = vsyncpa [#allocation4 + $0x1], 0 }
   0x5   :  { %17 = vsyncpa [#allocation10], 0 }
   0x6   :  { %19 = vsyncpa [#allocation10 + $0x1], 0  ;;  %s1020_s15 = smov 0   ;;  %s1022_s16 = smov 0  }
   0x7   :  { %s1024_s17 = smov 0   ;;  %s1026_s18 = smov 0  }
   0x8 LB: > { %s161_s21 = sshll.u32 %s1205_s1, 4  ;;  %s1044_s22 = sadd.s32 4294967295, %s989_s18   ;;  %s989_s18 = sphi %s1026_s18, %s1219_s18   ;;  %s985_s17 = sphi %s1024_s17, %s1218_s17   ;;  %s981_s16 = sphi %s1022_s16, %s1217_s16   ;;  %s977_s15 = sphi %s1020_s15, %s1216_s15   ;;  %s162_s21 = int_to_ptr.hbm [resolvable:$true] %s161_s21 }
   0x9   : > { %p633_p0 = scmp.ge.s32.totalorder %s989_s18, 1  ;;  %p46_p1 = scmp.eq.s32.totalorder %s1044_s22, 0 }
   0xa   : > { %p150_p2 = scmp.lt.s32.totalorder %s989_s18, 3  ;;  %s991_s24 = smov [#allocation5]  }
   0xb   : > { %s163_s25 = sshll.u32 %s991_s24, 4  ;;  %s176_s28 = sshll.u32 %s1206_s2, 4  ;;  %s164_s25 = int_to_ptr.vmem [resolvable:$true] %s163_s25  ;;  %s177_s28 = int_to_ptr.hbm [resolvable:$true] %s176_s28 }
   0xc   : > { %p1049_p3 = pnand %p633_p0, %p150_p2  ;;  %s992_s29 = smov [#allocation7]  }
   0xd   : > { %s178_s30 = sshll.u32 %s992_s29, 4  ;;  %s993_s5 = smov 320   ;;  %s179_s30 = int_to_ptr.vmem [resolvable:$true] %s178_s30 }
   0xe   : > { %p717_p4 = pneg %p1049_p3  ;;  %s994_s6 = smov 20  }
   0xf   : > { %s632_s7 = sadd.s32 4294967294, %s989_s18   ;;  %s1063_s8 = sadd.s32 1, %s989_s18  }
  0x10   : > { %p718_p6 = pnand %p717_p4, %p46_p1  ;;  %s29_s9 = ssub.s32 %s989_s18, %s1063_s8 }
  0x11   : > { %s32_s10 = sadd.s32 1, %s985_s17  ;;  %p30_p7 = scmp.eq.s32.totalorder %s29_s9, 0 }
  0x12   : > { %720 = dma.hbm_to_vmem [thread:$0]  (!%p718_p6), %s162_s21, 1280, %s164_s25, [#allocation6], %s993_s5, %s993_s5, %s994_s6  }
  0x13   : > { %723 = dma.hbm_to_vmem [thread:$0]  (!%p718_p6), %s177_s28, 80, %s179_s30, [#allocation6]  }
  0x14   : > { %p39_p8 = scmp.ne.s32.totalorder %s985_s17, %s981_s16  ;;  %p40_p9 = scmp.eq.s32.totalorder %s989_s18, 0 }
  0x15   : > { %p45_p10 = scmp.ne.s32.totalorder %s981_s16, %s977_s15  ;;  %p111_p13 = scmp.eq.s32.totalorder %s1044_s22, 1 }
  0x16   : > { %s1074_s11 = scalar_select %p30_p7, %s985_s17, %s32_s10  }
  0x17   : > { %p1076_p11 = por %p40_p9, %p39_p8  ;;  %p1082_p12 = por %p46_p1, %p45_p10 }
  0x18   : > { %p117_p0 = scmp.eq.s32.totalorder %s632_s7, 1  ;;  %p737_p2 = scmp.lt.s32.totalorder %s989_s18, 2 }
  0x19   : > { %s189_s14 = sand.u32 1, %s985_s17   ;;  %p1089_p4 = por %p111_p13, %p39_p8 }
  0x1a   : > { %p1093_p6 = por %p117_p0, %p45_p10  ;;  %s637_s21 = sshll.u32 %s189_s14, 2 }
  0x1b   : > { %s638_s24 = sshll.u32 %s989_s18, 2  ;;  %s193_s28 = scalar_lea.vmem [#allocation2], %s637_s21 }
  0x1c   : > { %s197_s27 = scalar_lea.hbm %s1204_s0, %s638_s24  ;;  %s201_s29 = sshll.u32 %s193_s28, 4  ;;  %s202_s29 = int_to_ptr.vmem [resolvable:$true] %s201_s29 }
  0x1d   : > { %s199_s30 = sshll.u32 %s197_s27, 4  ;;  %p1103_p7 = pnand %p737_p2, %p1076_p11  ;;  %s200_s30 = int_to_ptr.hbm [resolvable:$true] %s199_s30 }
  0x1e   : > { %s190_s6 = scalar_lea.sflag [#allocation3], %s189_s14  ;;  %s857_s7 = sshra.s32 %s200_s30, 4  ;;  %s858_s7 = int_to_ptr.hbm [resolvable:$true] %s857_s7 }
  0x1f   : > { %s859_s9 = scalar_lea.hbm %s858_s7, 4  ;;  %p861_p9 = pneg %p1103_p7 }
  0x20   : > { %p860_p8 = scmp.ne.s32.totalorder %s858_s7, %s859_s9  ;;  %s864_s24 = scalar_lea.hbm %s1204_s0, 8 }
  0x21   : > { %p865_p11 = scmp.lt.s32.totalorder %s858_s7, %s1204_s0  ;;  %p866_p0 = scmp.lt.s32.totalorder %s864_s24, %s859_s9 }
  0x22   : > { %p862_p10 = pnand %p861_p9, %p860_p8 }
  0x23   : > { %p867_p2 = por %p866_p0, %p865_p11 }
  0x24   : > { %p863_p13 = pneg %p862_p10 }
  0x26   : > { %p868_p5 = pnand %p867_p2, %p863_p13 }
  0x28   : > { %871 = shalt.err (!%p868_p5)
}
  0x29   : > { %727 = dma.hbm_to_vmem [thread:$0]  (!%p1103_p7), %s200_s30, 64, %s202_s29, %s190_s6  }
  0x2a   : > { %210 = sbr.rel (%p1049_p3) target bundleno = 471 (0x1d7), region = 32  ;;  %s1120_s14 = sand.u32 (!%p1049_p3), 1, %s981_s16  }
  0x2b   : > { %s640_s26 = sshll.u32 (!%p1049_p3), %s1120_s14, 2  ;;  %s213_s27 = scalar_lea.sflag (!%p1049_p3), [#allocation3], %s1120_s14 }
  0x2c   : > { %s1126_s28 = scalar_lea.vmem (!%p1049_p3), [#allocation2], %s640_s26 }
  0x2f   : > { %960 = dma.done.wait (%p1082_p12), %s213_s27, 64  }
  0x30   : > { %962 = vsyncadd (%p1082_p12), %s213_s27, 4294967232 }
  0x31   : > { %964 = dma.done.wait (%p46_p1), [#allocation6], 1360  }
  0x32   : > { %966 = vsyncadd (%p46_p1), [#allocation6], 4294965936  ;;  %v666_v0 = vld [vmem:[#allocation5 + $0x28] sm:$0xf]  ;;  %v700_v1 = vld [vmem:[#allocation5 + $0x38] sm:$0xf0]  ;;  %s510_s29 = scalar_lea.hbm %s1208_s4, %s1044_s22 }
  0x33   : > { %v674_v2 = vld [vmem:[#allocation5 + $0x30] sm:$0xf]  ;;  %v667_v3 = vor.u32 %v700_v1, %v666_v0  ;;  %v701_v4 = vld [vmem:[#allocation5 + $0x40] sm:$0xf0]  ;;  %v699_v5 = vld [vmem:[#allocation5 + $0x34] sm:$0xf] }
  0x34   : > { %v676_v6 = vld [vmem:[#allocation5 + $0x44] sm:$0xf0]  ;;  %v675_v7 = vor.u32 %v701_v4, %v674_v2  ;;  %v646_v9 = vld [vmem:[#allocation5] sm:$0xf]  ;;  %v695_v10 = vld [vmem:[#allocation5 + $0x10] sm:$0xf0] }
  0x35   : > { %v679_v8 = vor.u32 %v699_v5, %v676_v6  ;;  %v654_v11 = vld [vmem:[#allocation5 + $0x8] sm:$0xf]  ;;  %344 = vmatpush.bf16.msra.mxu0 %v667_v3  ;;  %v647_v12 = vor.u32 %v695_v10, %v646_v9  ;;  %v696_v13 = vld [vmem:[#allocation5 + $0x18] sm:$0xf0]  ;;  %v694_v14 = vld [vmem:[#allocation5 + $0xc] sm:$0xf] }
  0x36   : > { %v656_v15 = vld [vmem:[#allocation5 + $0x1c] sm:$0xf0]  ;;  %370 = vmatpush.bf16.msra.mxu2 %v675_v7  ;;  %v655_v16 = vor.u32 %v696_v13, %v654_v11  ;;  %v682_v18 = vld [vmem:[#allocation5 + $0x38] sm:$0xf]  ;;  %v702_v19 = vld [vmem:[#allocation5 + $0x48] sm:$0xf0] }
  0x37   : > { %383 = vmatpush.bf16.msra.mxu3 %v679_v8  ;;  %v659_v17 = vor.u32 %v694_v14, %v656_v15  ;;  %v683_v20 = vor.u32 %v702_v19, %v682_v18  ;;  %v662_v21 = vld [vmem:[#allocation5 + $0x10] sm:$0xf]  ;;  %v697_v22 = vld [vmem:[#allocation5 + $0x20] sm:$0xf0]  ;;  %v257_v23 = vld [vmem:[%s1126_s28] sm:$0xf] }
  0x38   : > { %vm334_vm0 = vcmask 261120   ;;  %v663_v24 = vor.u32 %v697_v22, %v662_v21  ;;  %v698_v25 = vld [vmem:[#allocation5 + $0x2c] sm:$0xf]  ;;  %v668_v26 = vld [vmem:[#allocation5 + $0x3c] sm:$0xf0]  ;;  %s255_s30 = scalar_lea.vmem [#allocation9], %s1120_s14 }
  0x39   : > { %345 = vmatpush.bf16.msra.mxu0 %v647_v12  ;;  %v693_v27 = vld [vmem:[#allocation5 + $0x4] sm:$0xf]  ;;  %v671_v28 = vor.u32 %v698_v25, %v668_v26  ;;  %v648_v29 = vld [vmem:[#allocation5 + $0x14] sm:$0xf0]  ;;  %v270_v30 = vld [vmem:[#allocation7] sm:$0x1f] }
  0x3a   : > { %371 = vmatpush.bf16.msra.mxu2 %v655_v16  ;;  %v651_v31 = vor.u32 %v693_v27, %v648_v29  ;;  %v272_v32 = vperm.slane %v270_v30, 0  ;;  %v274_v35 = vperm.slane %v270_v30, 2  ;;  %v275_v36 = vperm.slane %v270_v30, 3  ;;  %s1153_s5 = sshll.u32 %s255_s30, 4  ;;  %s514_s6 = sshll.u32 %s510_s29, 4  ;;  %s513_s5 = int_to_ptr.vmem [resolvable:$true] %s1153_s5  ;;  %s515_s6 = int_to_ptr.hbm [resolvable:$true] %s514_s6 }
  0x3b   : > { %384 = vmatpush.bf16.msra.mxu3 %v659_v17  ;;  %357 = vmatpush.bf16.msra.mxu1 %v671_v28  ;;  %v276_v42 = vperm.slane %v270_v30, 4  ;;  %v273_v2 = vperm.slane %v270_v30, 1  ;;  %s690_s7 = sshll.u32 %s1044_s22, 2  ;;  %s488_s24 = scalar_lea.sflag [#allocation10], %s1120_s14 }
  0x3c   : > { %684 = vmatmul.msk.bf16.vlgmr.msra.gmra.mxu0 %vm334_vm0, %v257_v23  ;;  %s497_s21 = scalar_lea.hbm %s1207_s3, %s690_s7  ;;  %s901_s25 = sshra.s32 %s515_s6, 4  ;;  %s902_s25 = int_to_ptr.hbm [resolvable:$true] %s901_s25 }
  0x3d   : > { %396 = vmatpush.bf16.msrb.mxu0 %v683_v20  ;;  %686 = vmatmul.msk.bf16.vlgmr.msra.gmra.mxu2 %vm334_vm0, %v257_v23  ;;  %s903_s12 = scalar_lea.hbm %s902_s25, 1  ;;  %s907_s28 = scalar_lea.hbm %s1208_s4, 2 }
  0x3e   : > { %687 = vmatmul.msk.bf16.vlgmr.msra.gmra.mxu3 %vm334_vm0, %v257_v23  ;;  %p904_p1 = scmp.ne.s32.totalorder %s902_s25, %s903_s12  ;;  %p908_p12 = scmp.lt.s32.totalorder %s902_s25, %s1208_s4 }
  0x3f   : > { %358 = vmatpush.bf16.msra.mxu1 %v651_v31  ;;  %p909_p7 = scmp.lt.s32.totalorder %s907_s28, %s903_s12 }
  0x40   : > { %p905_p3 = pnand %p904_p1, %p1089_p4 }
  0x41   : > { %397 = vmatpush.bf16.msrb.mxu0 %v663_v24  ;;  %p910_p8 = por %p909_p7, %p908_p12 }
  0x42   : > { %685 = vmatmul.msk.bf16.vlgmr.msra.gmra.mxu1 %vm334_vm0, %v257_v23  ;;  %p906_p5 = pneg %p905_p3 }
  0x44   : > { %p911_p9 = pnand %p910_p8, %p906_p5 }
  0x4c   : > { %688 = vmatmul.msk.bf16.vlgmr.msrb.gmra.mxu0 %vm334_vm0, %v257_v23 }
  0xb9   : > { %v347_v33 = vpop.f32.mrf.mxu0 }
  0xba   : > { %v348_v34 = vadd.f32 %v347_v33, %v272_v32 }
  0xbc   : > { %403 = vmax.xlane.f32.xlu0 %v348_v34 }
  0xbf   : > { %v360_v55 = vpop.f32.mrf.mxu1 }
  0xc0   : > { %v373_v37 = vpop.f32.mrf.mxu2  ;;  %v361_v3 = vadd.f32 %v360_v55, %v273_v2 }
  0xc1   : > { %v386_v38 = vpop.f32.mrf.mxu3  ;;  %v374_v39 = vadd.f32 %v373_v37, %v274_v35  ;;  %v349_v41 = vpop.f32.mrf.mxu0 }
  0xc2   : > { %v387_v40 = vadd.f32 %v386_v38, %v275_v36  ;;  %v412_v4 = vrot.slane %v361_v3, 4 }
  0xc4   : > { %459 = vmax.xlane.f32.xlu1 %v387_v40  ;;  %450 = vmax.xlane.f32.xlu0 %v374_v39  ;;  %v413_v5 = vmax.f32 %v361_v3, %v412_v4 }
  0xc6   : > { %v414_v6 = vrot.slane %v413_v5, 2 }
  0xc7   : > { %v362_v61 = vpop.f32.mrf.mxu1 }
  0xc8   : > { %v375_v43 = vpop.f32.mrf.mxu2  ;;  %v415_v7 = vmax.f32 %v413_v5, %v414_v6 }
  0xc9   : > { %v388_v44 = vpop.f32.mrf.mxu3  ;;  %v399_v45 = vpop.f32.mrf.mxu0 }
  0xca   : > { %v400_v46 = vadd.f32 %v399_v45, %v276_v42  ;;  %v416_v8 = vrot.slane %v415_v7, 1 }
  0xcc   : > { %469 = vmax.xlane.f32.xlu1 %v400_v46  ;;  %v417_v9 = vmax.f32 %v415_v7, %v416_v8 }
  0xce   : > { %v418_v10 = vsub.f32 %v361_v3, %v417_v9 }
  0xd0   : > { %v419_v11 = vmul.f32 1.442695, %v418_v10 }
  0xd1   : > { %v401_v47 = vpop.f32.mrf.mxu0 }
 0x12f   : > { %v404_v48 = vpop.xlane.xlu0 %403 }
 0x130   : > { %v405_v49 = vsub.f32 %v348_v34, %v404_v48 }
 0x132   : > { %v406_v50 = vmul.f32 1.442695, %v405_v49 }
 0x134   : > { %777 = vpow2.f32 %v406_v50 }
 0x137   : > { %v460_v51 = vpop.xlane.xlu1 %459  ;;  %v451_v53 = vpop.xlane.xlu0 %450 }
 0x138   : > { %v461_v52 = vsub.f32 %v387_v40, %v460_v51  ;;  %v452_v54 = vsub.f32 %v374_v39, %v451_v53 }
 0x13a   : > { %v462_v56 = vmul.f32 1.442695, %v461_v52  ;;  %v778_v57 = vpop.eup %777  ;;  %v453_v58 = vmul.f32 1.442695, %v452_v54 }
 0x13b   : > { %408 = vadd.xlane.f32.xlu2 %v778_v57 }
 0x13c   : > { %779 = vpow2.f32 %v462_v56 }
 0x13d   : > { %781 = vpow2.f32 %v453_v58 }
 0x13f   : > { %v470_v59 = vpop.xlane.xlu1 %469 }
 0x140   : > { %v471_v60 = vsub.f32 %v400_v46, %v470_v59 }
 0x142   : > { %v1142_v62 = vpop.eup %779  ;;  %v472_v0 = vmul.f32 1.442695, %v471_v60 }
 0x143   : > { %v782_v63 = vpop.eup %781  ;;  %464 = vadd.xlane.f32.xlu0 %v1142_v62 }
 0x144   : > { %455 = vadd.xlane.f32.xlu2 %v782_v63  ;;  %783 = vpow2.f32 %v472_v0 }
 0x145   : > { %785 = vpow2.f32 %v419_v11 }
 0x14a   : > { %v1145_v1 = vpop.eup %783 }
 0x14b   : > { %474 = vadd.xlane.f32.xlu1 %v1145_v1  ;;  %v786_v12 = vpop.eup %785 }
 0x14c   : > { %v421_v13 = vrot.slane %v786_v12, 4 }
 0x14e   : > { %v422_v14 = vadd.f32 %v786_v12, %v421_v13 }
 0x150   : > { %v423_v15 = vrot.slane %v422_v14, 2 }
 0x152   : > { %v424_v16 = vadd.f32 %v423_v15, %v422_v14 }
 0x154   : > { %v425_v17 = vrot.slane %v424_v16, 1 }
 0x156   : > { %v426_v18 = vadd.f32 %v425_v17, %v424_v16 }
 0x158   : > { %787 = vrcp.f32 %v426_v18  ;;  %vm432_vm1 = vweird.f32 %v426_v18  ;;  %v438_v23 = vand.u32 2147483648, %v426_v18  ;;  %v436_v25 = vand.u32 2147483647, %v426_v18 }
 0x15a   : > { %v439_v27 = vor.u32 1.1754944e-38, %v438_v23  ;;  %vm437_vm4 = vcmp.eq.f32.partialorder %v436_v25, 8.507059e+37 }
 0x15e   : > { %v788_v19 = vpop.eup %787 }
 0x15f   : > { %v428_v20 = vmul.f32 %v788_v19, %v426_v18  ;;  %vm433_vm2 = vweird.f32 %v788_v19 }
 0x160   : > { %vm434_vm3 = vmor %vm432_vm1, %vm433_vm2 }
 0x161   : > { %v429_v21 = vsub.f32 1.0, %v428_v20 }
 0x163   : > { %v430_v22 = vmul.f32 %v788_v19, %v429_v21 }
 0x165   : > { %v431_v24 = vadd.f32 %v788_v19, %v430_v22 }
 0x167   : > { %v435_v28 = vsel %vm434_vm3, %v788_v19, %v431_v24 }
 0x168   : > { %v440_v29 = vsel %vm437_vm4, %v439_v27, %v435_v28 }
 0x169   : > { %v441_v31 = vmul.f32 %v786_v12, %v440_v29 }
 0x1ae   : > { %v409_v26 = vpop.xlane.xlu2 %408 }
 0x1af   : > { %789 = vrcp.f32 %v409_v26 }
 0x1b5   : > { %v790_v30 = vpop.eup %789 }
 0x1b6   : > { %v411_v32 = vmul.f32 %v790_v30, %v778_v57  ;;  %v465_v35 = vpop.xlane.xlu0 %464 }
 0x1b7   : > { %v456_v33 = vpop.xlane.xlu2 %455 }
 0x1b8   : > { %v442_v34 = vmul.f32 %v441_v31, %v411_v32  ;;  %791 = vrcp.f32 %v456_v33 }
 0x1b9   : > { %793 = vrcp.f32 %v465_v35 }
 0x1ba   : > { %v443_v36 = vrot.slane %v442_v34, 4 }
 0x1bc   : > { %v444_v37 = vadd.f32 %v443_v36, %v442_v34 }
 0x1be   : > { %v445_v38 = vrot.slane %v444_v37, 2  ;;  %v475_v39 = vpop.xlane.xlu1 %474  ;;  %v792_v40 = vpop.eup %791 }
 0x1bf   : > { %795 = vrcp.f32 %v475_v39  ;;  %v794_v42 = vpop.eup %793  ;;  %v458_v43 = vmul.f32 %v792_v40, %v782_v63 }
 0x1c0   : > { %v446_v41 = vadd.f32 %v445_v38, %v444_v37  ;;  %v467_v45 = vmul.f32 %v794_v42, %v1142_v62 }
 0x1c2   : > { %v447_v44 = vrot.slane %v446_v41, 1  ;;  %v468_v48 = vadd.f32 %v467_v45, %v458_v43 }
 0x1c4   : > { %v448_v46 = vadd.f32 %v447_v44, %v446_v41 }
 0x1c5   : > { %v796_v47 = vpop.eup %795 }
 0x1c6   : > { %v477_v49 = vmul.f32 %v796_v47, %v1145_v1  ;;  %449 = vst [vmem:[%s255_s30] sm:$0x1] %v448_v46 }
 0x1c7   : > { %914 = shalt.err (!%p911_p9)
}
 0x1c8   : > { %714 = dma.vmem_to_hbm [thread:$0]  (%p1089_p4), %s513_s5, 16, %s515_s6, %s488_s24   ;;  %v478_v50 = vadd.f32 %v477_v49, %v468_v48 }
 0x1c9   : > { %s249_s29 = scalar_lea.vmem [#allocation8], %s640_s26  ;;  %s501_s7 = sshll.u32 %s497_s21, 4  ;;  %s502_s7 = int_to_ptr.hbm [resolvable:$true] %s501_s7 }
 0x1ca   : > { %s499_s30 = sshll.u32 %s249_s29, 4  ;;  %v479_v51 = vmul.f32 0.33333334, %v478_v50  ;;  %s483_s9 = scalar_lea.sflag [#allocation4], %s1120_s14  ;;  %s500_s30 = int_to_ptr.vmem [resolvable:$true] %s499_s30 }
 0x1cb   : > { %s929_s10 = sshra.s32 %s502_s7, 4  ;;  %s935_s6 = scalar_lea.hbm %s1207_s3, 8  ;;  %s930_s10 = int_to_ptr.hbm [resolvable:$true] %s929_s10 }
 0x1cc   : > { %v480_v52 = vpack.c.bf16 %v479_v51, %v479_v51  ;;  %s931_s25 = scalar_lea.hbm %s930_s10, 4  ;;  %p936_p0 = scmp.lt.s32.totalorder %s930_s10, %s1207_s3 }
 0x1cd   : > { %p932_p10 = scmp.ne.s32.totalorder %s930_s10, %s931_s25  ;;  %p937_p2 = scmp.lt.s32.totalorder %s935_s6, %s931_s25 }
 0x1ce   : > { %481 = vst [vmem:[%s249_s29] sm:$0xf] %v480_v52 }
 0x1cf   : > { %p933_p13 = pnand %p932_p10, %p1089_p4  ;;  %p938_p1 = por %p937_p2, %p936_p0 }
 0x1d1   : > { %p934_p11 = pneg %p933_p13 }
 0x1d3   : > { %p939_p3 = pnand %p938_p1, %p934_p11 }
 0x1d5   : > { %942 = shalt.err (!%p939_p3)
}
 0x1d6   : > { %713 = dma.vmem_to_hbm [thread:$0]  (%p1089_p4), %s500_s30, 64, %s502_s7, %s483_s9  }
 0x1d7 PF: > { %s526_s14 = sand.u32 1, %s977_s15   ;;  %p1215_p5 = scmp.ge.s32.totalorder %s989_s18, 2 }
 0x1d8   : > { %s527_s21 = scalar_lea.sflag [#allocation4], %s526_s14 }
 0x1d9   : > { %p729_p12 = pnand %p1215_p5, %p1093_p6 }
 0x1db   : > { %p730_p7 = pneg %p729_p12 }
 0x1dd   : > { %968 = dma.done.wait (%p730_p7), %s527_s21, 64  }
 0x1de   : > { %970 = vsyncadd (%p730_p7), %s527_s21, 4294967232  ;;  %s537_s22 = scalar_lea.sflag [#allocation10], %s526_s14 }
 0x1df   : > { %972 = dma.done.wait (%p730_p7), %s537_s22, 16  }
 0x1e0   : > { %974 = vsyncadd (%p730_p7), %s537_s22, 4294967280  ;;  %p22_p4 = scmp.ge.s32.totalorder %s1063_s8, 4   ;;  %s1216_s15 = smov %s981_s16 }
 0x1e1   : > { %s1217_s16 = smov %s985_s17  ;;  %s1218_s17 = smov %s1074_s11 }
 0x1e2   : > { %s1219_s18 = smov %s1063_s8  ;;  %24 = sbr.rel (!%p22_p4) target bundleno = 8 (0x8), region = 102 }
 0x1e7   :  { %542 = vsyncpa [#allocation3], 1 }
 0x1e8   :  { %544 = vsyncpa [#allocation3 + $0x1], 1 }
 0x1e9   :  { %545 = vsyncpa [#allocation6], 1 }
 0x1ea   :  { %546 = vsyncpa [#allocation4], 1 }
 0x1eb   :  { %548 = vsyncpa [#allocation4 + $0x1], 1 }
 0x1ec   :  { %549 = vsyncpa [#allocation10], 1 }
 0x1ed   :  { %551 = vsyncpa [#allocation10 + $0x1], 1 }

</bundles_post_ra>
